<compile_context>
chip_gen: v7x
topology: tpu7x:2x2x1
jax: 0.10.0
libtpu: 0.0.40
codegen_flags: <defaults>
</compile_context>

<pallas_src>
import jax
import jax.numpy as jnp
from jax.experimental import pallas as pl
from jax.experimental.pallas import tpu as pltpu


def ffn_kernel(x_ref, w1t_ref, b1_ref, w2t_ref, b2_ref, o_ref, h_ref):
    # x_ref:   (TM, D_MODEL)    current tile of tokens (bf16)
    # w1t_ref: (D_MODEL, D_FF)  = W1.T   (bf16, resident across the grid)
    # b1_ref:  (1, D_FF)        f32
    # w2t_ref: (D_FF, D_MODEL)  = W2.T   (bf16, resident across the grid)
    # b2_ref:  (1, D_MODEL)     f32
    # h_ref:   (TM, D_FF)       f32 VMEM scratch for the hidden activation

    # First matmul on the MXU, f32 accumulation, staged into VMEM scratch.
    h_ref[...] = jnp.dot(x_ref[...], w1t_ref[...],
                         preferred_element_type=jnp.float32)
    # f32 epilogue on the VPU: bias add + ReLU.
    h = jnp.maximum(h_ref[...] + b1_ref[...], 0.0)
    # TODO(synk): dropout has p=0.0 in this module -> identity; a nonzero-p
    # training-mode dropout would use pltpu.prng_seed + prng_random_bits here.
    # Second matmul: hidden cast back to MXU dtype, f32 accumulation.
    y = jnp.dot(h.astype(w2t_ref.dtype), w2t_ref[...],
                preferred_element_type=jnp.float32)
    o_ref[...] = (y + b2_ref[...]).astype(o_ref.dtype)


def ffn_pallas(x, w1, b1, w2, b2, *, tm=256, use_bf16=True):
    """x: (batch, seq, d_model); w1: (d_ff, d_model); w2: (d_model, d_ff)."""
    batch, seq, d_model = x.shape
    d_ff = w1.shape[0]
    M = batch * seq

    # Token tile: as large as requested, but never pad a tiny input up to a
    # huge tile; keep the sublane (second-to-last) dim a multiple of 8.
    tm_eff = min(tm, max(8, ((M + 7) // 8) * 8))
    M_pad = ((M + tm_eff - 1) // tm_eff) * tm_eff

    out_dtype = x.dtype
    mxu_dtype = jnp.bfloat16 if use_bf16 else x.dtype

    x2d = x.reshape(M, d_model)
    if M_pad != M:
        x2d = jnp.pad(x2d, ((0, M_pad - M), (0, 0)))  # padded rows sliced off
    x2d = x2d.astype(mxu_dtype)
    w1t = w1.T.astype(mxu_dtype)                     # (d_model, d_ff)
    w2t = w2.T.astype(mxu_dtype)                     # (d_ff, d_model)
    b1r = b1.reshape(1, d_ff).astype(jnp.float32)
    b2r = b2.reshape(1, d_model).astype(jnp.float32)

    # Grid-resident operands: constant index_map -> fetched once; single
    # buffered so no VMEM is wasted on a second (never used) pipeline buffer.
    def resident(shape):
        return pl.BlockSpec(shape, lambda i: (0, 0),
                            pipeline_mode=pl.Buffered(1))

    out2d = pl.pallas_call(
        ffn_kernel,
        out_shape=jax.ShapeDtypeStruct((M_pad, d_model), out_dtype),
        grid=(M_pad // tm_eff,),
        in_specs=[
            pl.BlockSpec((tm_eff, d_model), lambda i: (i, 0)),   # x tile
            resident((d_model, d_ff)),                           # W1^T
            resident((1, d_ff)),                                 # b1
            resident((d_ff, d_model)),                           # W2^T
            resident((1, d_model)),                              # b2
        ],
        out_specs=pl.BlockSpec((tm_eff, d_model), lambda i: (i, 0)),
        scratch_shapes=[pltpu.VMEM((tm_eff, d_ff), jnp.float32)],
        compiler_params=pltpu.CompilerParams(
            dimension_semantics=("parallel",),   # token axis shards across TCs
            # Explicit scoped VMEM: above the 16/32 MiB defaults so the large
            # tile fits, ~12% below v7x's 64 MiB physical limit.
            vmem_limit_bytes=56 * 1024 * 1024,
        ),
    )(x2d, w1t, b1r, w2t, b2r)

    if M_pad != M:
        out2d = out2d[:M]
    return out2d.reshape(batch, seq, d_model)


if __name__ == "__main__":
    # Small, MXU/VPU-friendly sizes consistent with the module
    # (d_model=512, d_ff=2048 in the paper; scaled down here).
    batch, seq, d_model, d_ff = 2, 8, 128, 256

    key = jax.random.PRNGKey(0)
    kx, kw1, kb1, kw2, kb2 = jax.random.split(key, 5)

    x = jax.random.normal(kx, (batch, seq, d_model), dtype=jnp.float32)
    # nn.Linear(d_model, d_ff): weight (d_ff, d_model), bias (d_ff,)
    w1 = jax.random.normal(kw1, (d_ff, d_model), dtype=jnp.float32) * 0.02
    b1 = jax.random.normal(kb1, (d_ff,), dtype=jnp.float32) * 0.02
    # nn.Linear(d_ff, d_model): weight (d_model, d_ff), bias (d_model,)
    w2 = jax.random.normal(kw2, (d_model, d_ff), dtype=jnp.float32) * 0.02
    b2 = jax.random.normal(kb2, (d_model,), dtype=jnp.float32) * 0.02

    out = ffn_pallas(x, w1, b1, w2, b2)
    out = jax.block_until_ready(out)

    # Pure-JAX f32 reference (same math as the PyTorch forward).
    ref = jnp.maximum(x @ w1.T + b1, 0.0) @ w2.T + b2
    assert out.shape == (batch, seq, d_model)
    # bf16 MXU operands + f32 accumulation -> loosened tolerance.
    err = float(jnp.max(jnp.abs(out - ref)))
    assert jnp.allclose(out, ref, atol=2e-2, rtol=2e-2), err

    print("KERNEL_OK")
</pallas_src>

<mosaic_0001>
module attributes {stable_mosaic.version = 11 : i64} {
  func.func @ffn_kernel(%arg0: i32, %arg1: memref<16x128xbf16, #tpu.memory_space<vmem>>, %arg2: memref<128x256xbf16, #tpu.memory_space<vmem>>, %arg3: memref<1x256xf32, #tpu.memory_space<vmem>>, %arg4: memref<256x128xbf16, #tpu.memory_space<vmem>>, %arg5: memref<1x128xf32, #tpu.memory_space<vmem>>, %arg6: memref<16x128xf32, #tpu.memory_space<vmem>>, %arg7: memref<16x256xf32, #tpu.memory_space<vmem>>) attributes {dimension_semantics = [#tpu.dimension_semantics<parallel>], iteration_bounds = array<i64: 1>, scalar_prefetch = 0 : i64, scratch_operands = 1 : i64, tpu.core_type = #tpu.core_type<tc>, window_params = [{transform_indices = @transform_0, window_bounds = array<i64: 16, 128>}, {pipeline_mode = #tpu.pipeline_mode<synchronous>, transform_indices = @transform_1, window_bounds = array<i64: 128, 256>}, {pipeline_mode = #tpu.pipeline_mode<synchronous>, transform_indices = @transform_2, window_bounds = array<i64: 1, 256>}, {pipeline_mode = #tpu.pipeline_mode<synchronous>, transform_indices = @transform_3, window_bounds = array<i64: 256, 128>}, {pipeline_mode = #tpu.pipeline_mode<synchronous>, transform_indices = @transform_4, window_bounds = array<i64: 1, 128>}, {transform_indices = @transform_5, window_bounds = array<i64: 16, 128>}]} {
    %c0 = arith.constant 0 : index
    %c0_0 = arith.constant 0 : index
    %0 = vector.load %arg1[%c0, %c0_0] : memref<16x128xbf16, #tpu.memory_space<vmem>>, vector<16x128xbf16>
    %c0_1 = arith.constant 0 : index
    %c0_2 = arith.constant 0 : index
    %1 = vector.load %arg2[%c0_1, %c0_2] : memref<128x256xbf16, #tpu.memory_space<vmem>>, vector<128x256xbf16>
    %cst = arith.constant dense<0.000000e+00> : vector<16x256xf32>
    %2 = tpu.matmul %0, %1, %cst {dimension_numbers = #tpu.dot_dimension_numbers<[1], [0], [0], [1], [0, 0, 1, 1], [], []>} : vector<16x128xbf16>, vector<128x256xbf16>, vector<16x256xf32> -> vector<16x256xf32>
    %c0_3 = arith.constant 0 : index
    %c0_4 = arith.constant 0 : index
    %3 = vector.load %arg7[%c0_3, %c0_4] : memref<16x256xf32, #tpu.memory_space<vmem>>, vector<16x256xf32>
    tpu.vector_store %arg7[%c0_3, %c0_4], %2 {strides = array<i32>} : memref<16x256xf32, #tpu.memory_space<vmem>>, vector<16x256xf32>,
    %c0_5 = arith.constant 0 : index
    %c0_6 = arith.constant 0 : index
    %4 = vector.load %arg7[%c0_5, %c0_6] : memref<16x256xf32, #tpu.memory_space<vmem>>, vector<16x256xf32>
    %c0_7 = arith.constant 0 : index
    %c0_8 = arith.constant 0 : index
    %5 = vector.load %arg3[%c0_7, %c0_8] : memref<1x256xf32, #tpu.memory_space<vmem>>, vector<1x256xf32>
    %6 = vector.broadcast %5 : vector<1x256xf32> to vector<16x256xf32>
    %7 = arith.addf %4, %6 : vector<16x256xf32>
    %cst_9 = arith.constant 0.000000e+00 : f32
    %8 = vector.broadcast %cst_9 : f32 to vector<16x256xf32>
    %9 = arith.maximumf %7, %8 : vector<16x256xf32>
    %10 = arith.truncf %9 : vector<16x256xf32> to vector<16x256xbf16>
    %c0_10 = arith.constant 0 : index
    %c0_11 = arith.constant 0 : index
    %11 = vector.load %arg4[%c0_10, %c0_11] : memref<256x128xbf16, #tpu.memory_space<vmem>>, vector<256x128xbf16>
    %cst_12 = arith.constant dense<0.000000e+00> : vector<16x128xf32>
    %12 = tpu.matmul %10, %11, %cst_12 {dimension_numbers = #tpu.dot_dimension_numbers<[1], [0], [0], [1], [0, 0, 1, 1], [], []>} : vector<16x256xbf16>, vector<256x128xbf16>, vector<16x128xf32> -> vector<16x128xf32>
    %c0_13 = arith.constant 0 : index
    %c0_14 = arith.constant 0 : index
    %13 = vector.load %arg5[%c0_13, %c0_14] : memref<1x128xf32, #tpu.memory_space<vmem>>, vector<1x128xf32>
    %14 = vector.broadcast %13 : vector<1x128xf32> to vector<16x128xf32>
    %15 = arith.addf %12, %14 : vector<16x128xf32>
    %c0_15 = arith.constant 0 : index
    %c0_16 = arith.constant 0 : index
    %16 = vector.load %arg6[%c0_15, %c0_16] : memref<16x128xf32, #tpu.memory_space<vmem>>, vector<16x128xf32>
    tpu.vector_store %arg6[%c0_15, %c0_16], %15 {strides = array<i32>} : memref<16x128xf32, #tpu.memory_space<vmem>>, vector<16x128xf32>,
    return
  }
  func.func @transform_0(%arg0: i32) -> (i32, i32) {
    %c0_i32 = arith.constant 0 : i32
    %c0_i32_0 = arith.constant 0 : i32
    return %arg0, %c0_i32 : i32, i32
  }
  func.func @transform_1(%arg0: i32) -> (i32, i32) {
    %c0_i32 = arith.constant 0 : i32
    %c0_i32_0 = arith.constant 0 : i32
    %c0_i32_1 = arith.constant 0 : i32
    return %c0_i32, %c0_i32_0 : i32, i32
  }
  func.func @transform_2(%arg0: i32) -> (i32, i32) {
    %c0_i32 = arith.constant 0 : i32
    %c0_i32_0 = arith.constant 0 : i32
    %c0_i32_1 = arith.constant 0 : i32
    return %c0_i32, %c0_i32_0 : i32, i32
  }
  func.func @transform_3(%arg0: i32) -> (i32, i32) {
    %c0_i32 = arith.constant 0 : i32
    %c0_i32_0 = arith.constant 0 : i32
    %c0_i32_1 = arith.constant 0 : i32
    return %c0_i32, %c0_i32_0 : i32, i32
  }
  func.func @transform_4(%arg0: i32) -> (i32, i32) {
    %c0_i32 = arith.constant 0 : i32
    %c0_i32_0 = arith.constant 0 : i32
    %c0_i32_1 = arith.constant 0 : i32
    return %c0_i32, %c0_i32_0 : i32, i32
  }
  func.func @transform_5(%arg0: i32) -> (i32, i32) {
    %c0_i32 = arith.constant 0 : i32
    %c0_i32_0 = arith.constant 0 : i32
    return %arg0, %c0_i32 : i32, i32
  }
}

</mosaic_0001>

<bundles_post_ra>
// kernel: tpu_custom_call.1
= control target key start
LH: loop header
LB: loop body
LE: loop exit
PB: predicated region body
PF: predicated region fallthrough
CT: control target
= control target key end

     0   :  { %10 = vsyncpa [#allocation4], 0  ;;  %s735_s0 = inlined_call_operand.hbm [shape: bf16[16,128], index: 0, kind: input, shape index: {}]   ;;  %s736_s1 = inlined_call_operand.hbm [shape: bf16[128,256], index: 1, kind: input, shape index: {}]   ;;  %s737_s2 = inlined_call_operand.vmem [shape: f32[1,256], index: 2, kind: input, shape index: {}]   ;;  %s738_s3 = inlined_call_operand.hbm [shape: bf16[256,128], index: 3, kind: input, shape index: {}]   ;;  %s739_s4 = inlined_call_operand.vmem [shape: f32[1,128], index: 4, kind: input, shape index: {}]   ;;  %s740_s5 = inlined_call_operand.hbm [shape: f32[16,128], index: 5, kind: output, shape index: {}]  }
   0x1   :  { %11 = vsyncpa [#allocation7], 0 }
   0x2   :  { %12 = vsyncpa [#allocation5], 0  ;;  %s636_s18 = smov [#allocation6]   ;;  %s542_s22 = scalar_lea.hbm %s736_s1, 2048 }
   0x3   :  { %s30_s19 = sshll.u32 %s636_s18, 4  ;;  %p543_p0 = scmp.ne.s32.totalorder %s736_s1, %s542_s22  ;;  %s31_s19 = int_to_ptr.vmem [resolvable:$true] %s30_s19 }
   0x4   :  { %p546_p1 = scmp.lt.u32.totalorder %s542_s22, %s736_s1 }
   0x6   :  { %p548_p2 = pnand %p546_p1, %p543_p0 }
   0x8   :  { %551 = shalt.err (!%p548_p2)
}
   0x9   :  { %s552_s27 = scalar_lea.vmem %s31_s19, 2048  ;;  %p557_p4 = scmp.lt.s32.totalorder %s31_s19, %s31_s19 }
   0xa   :  { %p553_p3 = scmp.ne.s32.totalorder %s31_s19, %s552_s27  ;;  %p558_p5 = scmp.lt.s32.totalorder %s552_s27, %s552_s27 }
   0xc   :  { %p559_p6 = por %p558_p5, %p557_p4 }
   0xe   :  { %p560_p7 = pnand %p559_p6, %p553_p3 }
  0x10   :  { %563 = shalt.err (!%p560_p7)
}
  0x11   :  { %s637_s28 = smov 128   ;;  %s638_s29 = smov 8  }
  0x12   :  { %36 = dma.hbm_to_vmem [thread:$0]  %s736_s1, 2048, %s31_s19, [#allocation7], %s637_s28, %s637_s28, %s638_s29  }
  0x13   :  { %s639_s7 = smov [#allocation3]   ;;  %s564_s11 = scalar_lea.hbm %s735_s0, 128 }
  0x14   :  { %s18_s8 = sshll.u32 %s639_s7, 4  ;;  %p565_p8 = scmp.ne.s32.totalorder %s735_s0, %s564_s11  ;;  %s19_s8 = int_to_ptr.vmem [resolvable:$true] %s18_s8 }
  0x15   :  { %p568_p9 = scmp.lt.u32.totalorder %s564_s11, %s735_s0 }
  0x17   :  { %p570_p10 = pnand %p568_p9, %p565_p8 }
  0x19   :  { %573 = shalt.err (!%p570_p10)
}
  0x1a   :  { %s574_s16 = scalar_lea.vmem %s19_s8, 128  ;;  %p579_p12 = scmp.lt.s32.totalorder %s19_s8, %s19_s8 }
  0x1b   :  { %p575_p11 = scmp.ne.s32.totalorder %s19_s8, %s574_s16  ;;  %p580_p13 = scmp.lt.s32.totalorder %s574_s16, %s574_s16 }
  0x1d   :  { %p581_p0 = por %p580_p13, %p579_p12 }
  0x1f   :  { %p582_p1 = pnand %p581_p0, %p575_p11 }
  0x21   :  { %585 = shalt.err (!%p582_p1)
}
  0x22   :  { %s640_s1 = smov 64   ;;  %s641_s17 = smov 4  }
  0x23   :  { %24 = dma.hbm_to_vmem [thread:$0]  %s735_s0, 128, %s19_s8, [#allocation4], %s640_s1, %s640_s1, %s641_s17  }
  0x24   :  { %s642_s20 = smov [#allocation8]   ;;  %s586_s24 = scalar_lea.hbm %s738_s3, 2048 }
  0x25   :  { %s44_s21 = sshll.u32 %s642_s20, 4  ;;  %p587_p2 = scmp.ne.s32.totalorder %s738_s3, %s586_s24  ;;  %s45_s21 = int_to_ptr.vmem [resolvable:$true] %s44_s21 }
  0x26   :  { %p590_p3 = scmp.lt.u32.totalorder %s586_s24, %s738_s3 }
  0x28   :  { %p592_p4 = pnand %p590_p3, %p587_p2 }
  0x2a   :  { %595 = shalt.err (!%p592_p4)
}
  0x2b   :  { %s596_s6 = scalar_lea.vmem %s45_s21, 2048  ;;  %p601_p6 = scmp.lt.s32.totalorder %s45_s21, %s45_s21 }
  0x2c   :  { %p597_p5 = scmp.ne.s32.totalorder %s45_s21, %s596_s6  ;;  %p602_p7 = scmp.lt.s32.totalorder %s596_s6, %s596_s6 }
  0x2e   :  { %p603_p8 = por %p602_p7, %p601_p6 }
  0x30   :  { %p604_p9 = pnand %p603_p8, %p597_p5 }
  0x32   :  { %607 = shalt.err (!%p604_p9)
}
  0x33   :  { %50 = dma.hbm_to_vmem [thread:$0]  %s738_s3, 2048, %s45_s21, [#allocation7], %s640_s1, %s640_s1, %s641_s17  }
  0x34   :  { %630 = dma.done.wait [#allocation4], 128  }
  0x35   :  { %631 = vsyncadd [#allocation4], 4294967168 }
  0x36   :  { %632 = dma.done.wait [#allocation7], 4096  }
  0x37   :  { %633 = vsyncadd [#allocation7], 4294963200  ;;  %v643_v0 = vmov 0   ;;  %v501_v1 = vld [vmem:[#allocation6 + $0x4] ss:$8 sps:$4 sm:$0xff]   ;;  %v530_v16 = vld [vmem:[#allocation8 + $0x50] sm:$0xff]   ;;  %v220_v34 = vlaneseq }
  0x38   :  { %199 = vmatprep.mubr.bf16.mxu0 %v643_v0  ;;  %v503_v2 = vld [vmem:[#allocation6] ss:$8 sps:$4 sm:$0xff]   ;;  %167 = vmatprep.subr.bf16.mxu0 %v501_v1  ;;  %v504_v3 = vld [vmem:[#allocation6 + $0x14] ss:$8 sps:$4 sm:$0xff]   ;;  %v506_v4 = vld [vmem:[#allocation6 + $0x10] ss:$8 sps:$4 sm:$0xff]  }
  0x39   :  { %168 = vmatpush1.bf16.msra.mxu0 %v503_v2  ;;  %v507_v5 = vld [vmem:[#allocation6 + $0x24] ss:$8 sps:$4 sm:$0xff]   ;;  %v509_v6 = vld [vmem:[#allocation6 + $0x20] ss:$8 sps:$4 sm:$0xff]   ;;  %v510_v7 = vld [vmem:[#allocation6 + $0x34] ss:$8 sps:$4 sm:$0xff]  }
  0x3a   :  { %169 = vmatprep.subr.bf16.mxu0 %v504_v3  ;;  %v512_v8 = vld [vmem:[#allocation6 + $0x30] ss:$8 sps:$4 sm:$0xff]   ;;  %v513_v9 = vld [vmem:[#allocation6 + $0x44] ss:$8 sps:$4 sm:$0xff]   ;;  %v515_v11 = vld [vmem:[#allocation6 + $0x40] ss:$8 sps:$4 sm:$0xff]  }
  0x3b   :  { %v526_v10 = vld [vmem:[#allocation8 + $0x40] sm:$0xff]   ;;  %v516_v13 = vld [vmem:[#allocation6 + $0x54] ss:$8 sps:$4 sm:$0xff]   ;;  %v528_v14 = vld [vmem:[#allocation8 + $0x48] sm:$0xff]   ;;  %v221_v35 = vshrl.u32 %v220_v34, 7  ;;  %s644_s10 = smov [#allocation9]  }
  0x3c   :  { %v527_v12 = vld [vmem:[#allocation8] sm:$0xff]   ;;  %470 = vmatprep.subr.bf16.mxu1 %v526_v10  ;;  %v529_v15 = vld [vmem:[#allocation8 + $0x8] sm:$0xff]   ;;  %v518_v17 = vld [vmem:[#allocation6 + $0x50] ss:$8 sps:$4 sm:$0xff]   ;;  %s423_s11 = sshll.u32 %s644_s10, 4  ;;  %s424_s11 = int_to_ptr.vmem [resolvable:$true] %s423_s11 }
  0x3d   :  { %170 = vmatpush1.bf16.msra.mxu0 %v506_v4  ;;  %471 = vmatpush3.bf16.msra.mxu1 %v527_v12  ;;  %v519_v18 = vld [vmem:[#allocation6 + $0x64] ss:$8 sps:$4 sm:$0xff]   ;;  %v531_v19 = vld [vmem:[#allocation8 + $0x10] sm:$0xff]   ;;  %v532_v20 = vld [vmem:[#allocation8 + $0x58] sm:$0xff]   ;;  %v222_v36 = vsub.s32 0, %v221_v35  ;;  %v226_v38 = vsub.s32 1, %v221_v35  ;;  %p613_p11 = scmp.lt.s32.totalorder %s424_s11, %s424_s11 }
  0x3e   :  { %171 = vmatprep.subr.bf16.mxu0 %v507_v5  ;;  %472 = vmatprep.subr.bf16.mxu1 %v528_v14  ;;  %v521_v21 = vld [vmem:[#allocation6 + $0x60] ss:$8 sps:$4 sm:$0xff]   ;;  %v533_v22 = vld [vmem:[#allocation8 + $0x18] sm:$0xff]   ;;  %v538_v30 = vld [vmem:[#allocation8 + $0x70] sm:$0xff]   ;;  %s608_s12 = scalar_lea.vmem %s424_s11, 256 }
  0x3f   :  { %v522_v23 = vld [vmem:[#allocation6 + $0x74] ss:$8 sps:$4 sm:$0xff]   ;;  %v534_v24 = vld [vmem:[#allocation8 + $0x60] sm:$0xff]   ;;  %v524_v25 = vld [vmem:[#allocation6 + $0x70] ss:$8 sps:$4 sm:$0xff]   ;;  %p609_p10 = scmp.ne.s32.totalorder %s424_s11, %s608_s12  ;;  %p614_p12 = scmp.lt.s32.totalorder %s608_s12, %s608_s12 }
  0x40   :  { %v535_v26 = vld [vmem:[#allocation8 + $0x20] sm:$0xff]   ;;  %v536_v27 = vld [vmem:[#allocation8 + $0x68] sm:$0xff]   ;;  %v525_v28 = vld [vmem:[#allocation3] sm:$0xff]  }
  0x41   :  { %172 = vmatpush1.bf16.msra.mxu0 %v509_v6  ;;  %473 = vmatpush3.bf16.msra.mxu1 %v529_v15  ;;  %v537_v29 = vld [vmem:[#allocation8 + $0x28] sm:$0xff]   ;;  %v539_v31 = vld [vmem:[#allocation8 + $0x30] sm:$0xff]   ;;  %v540_v32 = vld [vmem:[#allocation8 + $0x78] sm:$0xff]   ;;  %p615_p13 = por %p614_p12, %p613_p11 }
  0x42   :  { %173 = vmatprep.subr.bf16.mxu0 %v510_v7  ;;  %474 = vmatprep.subr.bf16.mxu1 %v530_v16  ;;  %v541_v33 = vld [vmem:[#allocation8 + $0x38] sm:$0xff]  }
  0x43   :  { %v218_v37 = vld [vmem:[%s737_s2] sm:$0x3]  ;;  %p616_p0 = pnand %p615_p13, %p609_p10 }
  0x44   :  { %v223_v39 = vrot.slane %v218_v37, %v222_v36  ;;  %v227_v40 = vrot.slane %v218_v37, %v226_v38  ;;  %v453_v56 = vld [vmem:[%s739_s4] ss:$0 sm:$0xff] }
  0x45   :  { %174 = vmatpush1.bf16.msra.mxu0 %v512_v8  ;;  %475 = vmatpush3.bf16.msra.mxu1 %v531_v19 }
  0x46   :  { %175 = vmatprep.subr.bf16.mxu0 %v513_v9  ;;  %476 = vmatprep.subr.bf16.mxu1 %v532_v20 }
  0x49   :  { %176 = vmatpush1.bf16.msra.mxu0 %v515_v11  ;;  %477 = vmatpush3.bf16.msra.mxu1 %v533_v22 }
  0x4a   :  { %177 = vmatprep.subr.bf16.mxu0 %v516_v13  ;;  %478 = vmatprep.subr.bf16.mxu1 %v534_v24 }
  0x4d   :  { %178 = vmatpush1.bf16.msra.mxu0 %v518_v17  ;;  %479 = vmatpush3.bf16.msra.mxu1 %v535_v26 }
  0x4e   :  { %179 = vmatprep.subr.bf16.mxu0 %v519_v18  ;;  %480 = vmatprep.subr.bf16.mxu1 %v536_v27 }
  0x51   :  { %180 = vmatpush1.bf16.msra.mxu0 %v521_v21  ;;  %481 = vmatpush3.bf16.msra.mxu1 %v537_v29 }
  0x52   :  { %181 = vmatprep.subr.bf16.mxu0 %v522_v23  ;;  %482 = vmatprep.subr.bf16.mxu1 %v538_v30 }
  0x55   :  { %182 = vmatpush1.bf16.msra.mxu0 %v524_v25  ;;  %483 = vmatpush3.bf16.msra.mxu1 %v539_v31 }
  0x56   :  { %484 = vmatprep.subr.bf16.mxu1 %v540_v32 }
  0x58   :  { %200 = vmatmul.mubr.bf16.vlgmr.msra.gmra.mrb[0].mxu0 %v525_v28 }
  0x59   :  { %485 = vmatpush3.bf16.msra.mxu1 %v541_v33 }
 0x12b   :  { %v201_v41 = vpop.f32.mrb[0].mxu0 }
 0x12c   :  { %v230_v42 = vadd.f32 %v223_v39, %v201_v41  ;;  %v203_v43 = vpop.f32.mrb[1].mxu0 }
 0x12d   :  { %v231_v44 = vadd.f32 %v227_v40, %v203_v43  ;;  %v205_v45 = vpop.f32.mrb[2].mxu0 }
 0x12e   :  { %v232_v46 = vadd.f32 %v223_v39, %v205_v45  ;;  %v207_v47 = vpop.f32.mrb[3].mxu0  ;;  %v234_v49 = vmax.f32 %v230_v42, 0.0 }
 0x12f   :  { %v233_v48 = vadd.f32 %v227_v40, %v207_v47  ;;  %v235_v51 = vmax.f32 %v231_v44, 0.0 }
 0x130   :  { %v236_v50 = vmax.f32 %v232_v46, 0.0 }
 0x131   :  { %v237_v52 = vmax.f32 %v233_v48, 0.0 }
 0x132   :  { %v238_v53 = vpack.c.bf16 %v236_v50, %v234_v49 }
 0x133   :  { %v239_v54 = vpack.c.bf16 %v237_v52, %v235_v51 }
 0x135   :  { %407 = vmatprep.mubr.bf16.mxu1 %v239_v54 }
 0x136   :  { %408 = vmatmul.mubr.bf16.vlgmr.msra.gmra.mrb[0].mxu1 %v238_v53 }
 0x209   :  { %v486_v55 = vpop.f32.mrb[0].mxu1 }
 0x20a   :  { %v487_v57 = vpop.f32.mrb[1].mxu1 }
 0x20b   :  { %v488_v58 = vadd.f32 %v487_v57, %v486_v55  ;;  %v489_v59 = vpop.f32.mrb[2].mxu1 }
 0x20c   :  { %v490_v60 = vpop.f32.mrb[3].mxu1 }
 0x20d   :  { %v410_v61 = vadd.f32 %v488_v58, %v453_v56  ;;  %v491_v62 = vadd.f32 %v490_v60, %v489_v59 }
 0x20f   :  { %416 = vst [vmem:[#allocation9] sm:$0xff] %v410_v61  ;;  %v413_v63 = vadd.f32 %v491_v62, %v453_v56 }
 0x211   :  { %417 = vst [vmem:[#allocation9 + $0x8] sm:$0xff] %v413_v63 }
 0x212   :  { %619 = shalt.err (!%p616_p0)
}
 0x213   :  { %s620_s14 = scalar_lea.hbm %s740_s5, 256 }
 0x214   :  { %p621_p1 = scmp.ne.s32.totalorder %s740_s5, %s620_s14  ;;  %p624_p2 = scmp.lt.u32.totalorder %s620_s14, %s740_s5 }
 0x216   :  { %p626_p3 = pnand %p624_p2, %p621_p1 }
 0x218   :  { %629 = shalt.err (!%p626_p3)
}
 0x219   :  { %429 = dma.vmem_to_hbm [thread:$0]  %s424_s11, 256, %s740_s5, [#allocation5], %s637_s28, %s637_s28, %s638_s29  }
 0x21a   :  { %634 = dma.done.wait [#allocation5], 256  }
 0x21b   :  { %635 = vsyncadd [#allocation5], 4294967040 }
 0x21c   :  { %433 = vsyncpa [#allocation4], 1 }
 0x21d   :  { %434 = vsyncpa [#allocation7], 1 }
 0x21e   :  { %435 = vsyncpa [#allocation5], 1 }

</bundles_post_ra>
